<compile_context>
chip_gen: v5e
topology: v5e:2x2
jax: 0.10.0
libtpu: 0.0.40
codegen_flags: <defaults>
</compile_context>

<pallas_src>
import numpy as np
import jax
import jax.numpy as jnp
from jax.experimental import pallas as pl
from jax.experimental.pallas import tpu as pltpu

# SH shading constants
_C1 = 0.429043
_C2 = 0.511664
_C3 = 0.743152
_C4 = 0.886227
_C5 = 0.247708

# Default batch-tile width (lane axis). Footprint with double buffering is
# roughly 2 * (9 + 16) * 4 * TB bytes = 200 * TB  ->  ~13 MiB at 65536,
# comfortably inside the 32 MiB default scoped VMEM limit on v5e/v6e/v7x.
_DEFAULT_TB = 64 * 1024


def _round_up(x: int, m: int) -> int:
    return ((x + m - 1) // m) * m


def _mmatrix_kernel(lt_ref, mt_ref):
    """lt_ref: (9, TB) L^T tile; mt_ref: (16, TB) M^T tile (flattened 4x4)."""
    l = lt_ref[...]  # (9, TB) float32

    def row(i):
        return l[i:i + 1, :]  # (1, TB) static slice

    m = jnp.concatenate(
        [
            # row 0 of M
            _C1 * row(8),                  # M00
            _C1 * row(4),                  # M01
            _C1 * row(7),                  # M02
            _C2 * row(3),                  # M03
            # row 1
            _C1 * row(4),                  # M10
            -_C1 * row(8),                 # M11
            _C1 * row(5),                  # M12
            _C2 * row(1),                  # M13
            # row 2
            _C1 * row(7),                  # M20
            _C1 * row(5),                  # M21
            _C3 * row(6),                  # M22
            _C2 * row(2),                  # M23
            # row 3
            _C2 * row(3),                  # M30
            _C2 * row(1),                  # M31
            _C2 * row(2),                  # M32
            _C4 * row(0) - _C5 * row(6),   # M33
        ],
        axis=0,
    )  # (16, TB)

    # Single full-tile, lane-dense, unmasked store.
    mt_ref[...] = m.astype(mt_ref.dtype)


def mmatrix(L: jax.Array, *, tb: int = _DEFAULT_TB) -> jax.Array:
    """Pallas equivalent of MMatrix.forward. L: (B, 9) -> M: (B, 4, 4)."""
    assert L.ndim == 2 and L.shape[1] == 9, L.shape
    B = L.shape[0]

    # Lane-dense transposed layout: batch on the 128-lane axis.
    Lt = L.T  # (9, B)

    # Tile width on the lane (batch) axis: multiple of 128, capped by `tb`.
    TB = min(tb, _round_up(B, 128))
    Bp = _round_up(B, TB)
    if Bp != B:
        Lt = jnp.pad(Lt, ((0, 0), (0, Bp - B)))

    grid = (Bp // TB,)

    mt = pl.pallas_call(
        _mmatrix_kernel,
        out_shape=jax.ShapeDtypeStruct((16, Bp), L.dtype),
        grid_spec=pl.GridSpec(
            grid=grid,
            in_specs=[pl.BlockSpec((9, TB), lambda i: (0, i))],
            out_specs=pl.BlockSpec((16, TB), lambda i: (0, i)),
        ),
        compiler_params=pltpu.CompilerParams(
            # Batch tiles are independent -> shard across TCs on v7x.
            dimension_semantics=("parallel",),
        ),
    )(Lt)

    # (16, Bp) -> drop padding -> (B, 16) -> (B, 4, 4): plain-JAX glue.
    return mt[:, :B].T.reshape(B, 4, 4)


def _mmatrix_ref(L: jnp.ndarray) -> jnp.ndarray:
    """Pure-JAX reference mirroring the PyTorch forward exactly."""
    c1, c2, c3, c4, c5 = _C1, _C2, _C3, _C4, _C5
    M00 = c1 * L[:, 8]
    M01 = c1 * L[:, 4]
    M02 = c1 * L[:, 7]
    M03 = c2 * L[:, 3]
    M10 = c1 * L[:, 4]
    M11 = -c1 * L[:, 8]
    M12 = c1 * L[:, 5]
    M13 = c2 * L[:, 1]
    M20 = c1 * L[:, 7]
    M21 = c1 * L[:, 5]
    M22 = c3 * L[:, 6]
    M23 = c2 * L[:, 2]
    M30 = c2 * L[:, 3]
    M31 = c2 * L[:, 1]
    M32 = c2 * L[:, 2]
    M33 = c4 * L[:, 0] - c5 * L[:, 6]
    M0 = jnp.stack([M00, M01, M02, M03], axis=1)
    M1 = jnp.stack([M10, M11, M12, M13], axis=1)
    M2 = jnp.stack([M20, M21, M22, M23], axis=1)
    M3 = jnp.stack([M30, M31, M32, M33], axis=1)
    return jnp.stack([M0, M1, M2, M3], axis=1)


if __name__ == "__main__":
    key = jax.random.PRNGKey(0)

    # Small-shape test consistent with the module: L is (batch, 9) SH coeffs.
    B = 8
    L = jax.random.normal(key, (B, 9), dtype=jnp.float32)

    M = mmatrix(L)
    M = jax.block_until_ready(M)
    M_ref = _mmatrix_ref(L)
    assert M.shape == (B, 4, 4), M.shape
    np.testing.assert_allclose(np.asarray(M), np.asarray(M_ref), rtol=1e-5, atol=1e-6)

    # Second check exercising padding + multi-tile grid (TB forced to 128).
    B2 = 300
    L2 = jax.random.normal(jax.random.PRNGKey(1), (B2, 9), dtype=jnp.float32)
    M2 = jax.block_until_ready(mmatrix(L2, tb=128))
    np.testing.assert_allclose(
        np.asarray(M2), np.asarray(_mmatrix_ref(L2)), rtol=1e-5, atol=1e-6
    )

    print("KERNEL_OK")
</pallas_src>

<mosaic_0001>
module attributes {stable_mosaic.version = 11 : i64} {
  func.func @_mmatrix_kernel(%arg0: i32, %arg1: memref<9x128xf32, #tpu.memory_space<vmem>>, %arg2: memref<16x128xf32, #tpu.memory_space<vmem>>) attributes {dimension_semantics = [#tpu.dimension_semantics<parallel>], iteration_bounds = array<i64: 1>, scalar_prefetch = 0 : i64, scratch_operands = 0 : i64, tpu.core_type = #tpu.core_type<tc>, window_params = [{transform_indices = @transform_0, window_bounds = array<i64: 9, 128>}, {transform_indices = @transform_1, window_bounds = array<i64: 16, 128>}]} {
    %c0 = arith.constant 0 : index
    %c0_0 = arith.constant 0 : index
    %0 = vector.load %arg1[%c0, %c0_0] : memref<9x128xf32, #tpu.memory_space<vmem>>, vector<9x128xf32>
    %1 = vector.extract_strided_slice %0 {offsets = [8, 0], sizes = [1, 128], strides = [1, 1]} : vector<9x128xf32> to vector<1x128xf32>
    %cst = arith.constant 4.290430e-01 : f32
    %2 = vector.broadcast %cst : f32 to vector<1x128xf32>
    %3 = arith.mulf %2, %1 : vector<1x128xf32>
    %4 = vector.extract_strided_slice %0 {offsets = [4, 0], sizes = [1, 128], strides = [1, 1]} : vector<9x128xf32> to vector<1x128xf32>
    %cst_1 = arith.constant 4.290430e-01 : f32
    %5 = vector.broadcast %cst_1 : f32 to vector<1x128xf32>
    %6 = arith.mulf %5, %4 : vector<1x128xf32>
    %7 = vector.extract_strided_slice %0 {offsets = [7, 0], sizes = [1, 128], strides = [1, 1]} : vector<9x128xf32> to vector<1x128xf32>
    %cst_2 = arith.constant 4.290430e-01 : f32
    %8 = vector.broadcast %cst_2 : f32 to vector<1x128xf32>
    %9 = arith.mulf %8, %7 : vector<1x128xf32>
    %10 = vector.extract_strided_slice %0 {offsets = [3, 0], sizes = [1, 128], strides = [1, 1]} : vector<9x128xf32> to vector<1x128xf32>
    %cst_3 = arith.constant 5.116640e-01 : f32
    %11 = vector.broadcast %cst_3 : f32 to vector<1x128xf32>
    %12 = arith.mulf %11, %10 : vector<1x128xf32>
    %13 = vector.extract_strided_slice %0 {offsets = [4, 0], sizes = [1, 128], strides = [1, 1]} : vector<9x128xf32> to vector<1x128xf32>
    %cst_4 = arith.constant 4.290430e-01 : f32
    %14 = vector.broadcast %cst_4 : f32 to vector<1x128xf32>
    %15 = arith.mulf %14, %13 : vector<1x128xf32>
    %16 = vector.extract_strided_slice %0 {offsets = [8, 0], sizes = [1, 128], strides = [1, 1]} : vector<9x128xf32> to vector<1x128xf32>
    %cst_5 = arith.constant -4.290430e-01 : f32
    %17 = vector.broadcast %cst_5 : f32 to vector<1x128xf32>
    %18 = arith.mulf %17, %16 : vector<1x128xf32>
    %19 = vector.extract_strided_slice %0 {offsets = [5, 0], sizes = [1, 128], strides = [1, 1]} : vector<9x128xf32> to vector<1x128xf32>
    %cst_6 = arith.constant 4.290430e-01 : f32
    %20 = vector.broadcast %cst_6 : f32 to vector<1x128xf32>
    %21 = arith.mulf %20, %19 : vector<1x128xf32>
    %22 = vector.extract_strided_slice %0 {offsets = [1, 0], sizes = [1, 128], strides = [1, 1]} : vector<9x128xf32> to vector<1x128xf32>
    %cst_7 = arith.constant 5.116640e-01 : f32
    %23 = vector.broadcast %cst_7 : f32 to vector<1x128xf32>
    %24 = arith.mulf %23, %22 : vector<1x128xf32>
    %25 = vector.extract_strided_slice %0 {offsets = [7, 0], sizes = [1, 128], strides = [1, 1]} : vector<9x128xf32> to vector<1x128xf32>
    %cst_8 = arith.constant 4.290430e-01 : f32
    %26 = vector.broadcast %cst_8 : f32 to vector<1x128xf32>
    %27 = arith.mulf %26, %25 : vector<1x128xf32>
    %28 = vector.extract_strided_slice %0 {offsets = [5, 0], sizes = [1, 128], strides = [1, 1]} : vector<9x128xf32> to vector<1x128xf32>
    %cst_9 = arith.constant 4.290430e-01 : f32
    %29 = vector.broadcast %cst_9 : f32 to vector<1x128xf32>
    %30 = arith.mulf %29, %28 : vector<1x128xf32>
    %31 = vector.extract_strided_slice %0 {offsets = [6, 0], sizes = [1, 128], strides = [1, 1]} : vector<9x128xf32> to vector<1x128xf32>
    %cst_10 = arith.constant 7.431520e-01 : f32
    %32 = vector.broadcast %cst_10 : f32 to vector<1x128xf32>
    %33 = arith.mulf %32, %31 : vector<1x128xf32>
    %34 = vector.extract_strided_slice %0 {offsets = [2, 0], sizes = [1, 128], strides = [1, 1]} : vector<9x128xf32> to vector<1x128xf32>
    %cst_11 = arith.constant 5.116640e-01 : f32
    %35 = vector.broadcast %cst_11 : f32 to vector<1x128xf32>
    %36 = arith.mulf %35, %34 : vector<1x128xf32>
    %37 = vector.extract_strided_slice %0 {offsets = [3, 0], sizes = [1, 128], strides = [1, 1]} : vector<9x128xf32> to vector<1x128xf32>
    %cst_12 = arith.constant 5.116640e-01 : f32
    %38 = vector.broadcast %cst_12 : f32 to vector<1x128xf32>
    %39 = arith.mulf %38, %37 : vector<1x128xf32>
    %40 = vector.extract_strided_slice %0 {offsets = [1, 0], sizes = [1, 128], strides = [1, 1]} : vector<9x128xf32> to vector<1x128xf32>
    %cst_13 = arith.constant 5.116640e-01 : f32
    %41 = vector.broadcast %cst_13 : f32 to vector<1x128xf32>
    %42 = arith.mulf %41, %40 : vector<1x128xf32>
    %43 = vector.extract_strided_slice %0 {offsets = [2, 0], sizes = [1, 128], strides = [1, 1]} : vector<9x128xf32> to vector<1x128xf32>
    %cst_14 = arith.constant 5.116640e-01 : f32
    %44 = vector.broadcast %cst_14 : f32 to vector<1x128xf32>
    %45 = arith.mulf %44, %43 : vector<1x128xf32>
    %46 = vector.extract_strided_slice %0 {offsets = [0, 0], sizes = [1, 128], strides = [1, 1]} : vector<9x128xf32> to vector<1x128xf32>
    %cst_15 = arith.constant 8.862270e-01 : f32
    %47 = vector.broadcast %cst_15 : f32 to vector<1x128xf32>
    %48 = arith.mulf %47, %46 : vector<1x128xf32>
    %49 = vector.extract_strided_slice %0 {offsets = [6, 0], sizes = [1, 128], strides = [1, 1]} : vector<9x128xf32> to vector<1x128xf32>
    %cst_16 = arith.constant 2.477080e-01 : f32
    %50 = vector.broadcast %cst_16 : f32 to vector<1x128xf32>
    %51 = arith.mulf %50, %49 : vector<1x128xf32>
    %52 = arith.subf %48, %51 : vector<1x128xf32>
    %53 = tpu.concatenate %3, %6, %9, %12, %15, %18, %21, %24, %27, %30, %33, %36, %39, %42, %45, %52 in 0 : vector<1x128xf32>, vector<1x128xf32>, vector<1x128xf32>, vector<1x128xf32>, vector<1x128xf32>, vector<1x128xf32>, vector<1x128xf32>, vector<1x128xf32>, vector<1x128xf32>, vector<1x128xf32>, vector<1x128xf32>, vector<1x128xf32>, vector<1x128xf32>, vector<1x128xf32>, vector<1x128xf32>, vector<1x128xf32> -> vector<16x128xf32>
    %c0_17 = arith.constant 0 : index
    %c0_18 = arith.constant 0 : index
    %54 = vector.load %arg2[%c0_17, %c0_18] : memref<16x128xf32, #tpu.memory_space<vmem>>, vector<16x128xf32>
    tpu.vector_store %arg2[%c0_17, %c0_18], %53 {strides = array<i32>} : memref<16x128xf32, #tpu.memory_space<vmem>>, vector<16x128xf32>,
    return
  }
  func.func @transform_0(%arg0: i32) -> (i32, i32) {
    %c0_i32 = arith.constant 0 : i32
    %c0_i32_0 = arith.constant 0 : i32
    return %c0_i32, %arg0 : i32, i32
  }
  func.func @transform_1(%arg0: i32) -> (i32, i32) {
    %c0_i32 = arith.constant 0 : i32
    %c0_i32_0 = arith.constant 0 : i32
    return %c0_i32, %arg0 : i32, i32
  }
}

</mosaic_0001>

<bundles_post_ra>
// kernel: tpu_custom_call.1
= control target key start
LH: loop header
LB: loop body
LE: loop exit
PB: predicated region body
PF: predicated region fallthrough
CT: control target
= control target key end

     0   :  { %6 = vsyncpa [#allocation3], 0  ;;  %s199_s0 = inlined_call_operand.hbm [shape: f32[9,128], index: 0, kind: input, shape index: {}]   ;;  %s200_s1 = inlined_call_operand.hbm [shape: f32[16,128], index: 1, kind: output, shape index: {}]  }
   0x1   :  { %7 = vsyncpa [#allocation4], 0  ;;  %s12_s8 = sshll.u32 %s199_s0, 4  ;;  %s161_s9 = smov [#allocation2]   ;;  %s13_s8 = int_to_ptr.hbm [resolvable:$true] %s12_s8 }
   0x2   :  { %s14_s10 = sshll.u32 %s161_s9, 4  ;;  %s162_s11 = smov 128   ;;  %s15_s10 = int_to_ptr.vmem [resolvable:$true] %s14_s10 }
   0x3   :  { %s163_s12 = smov 8  }
   0x4   :  { %20 = dma.hbm_to_vmem [thread:$0]  %s13_s8, 256, %s15_s10, [#allocation3], %s162_s11, %s162_s11, %s163_s12  }
   0x5   :  { %157 = dma.done.wait [#allocation3], 256  }
   0x6   :  { %158 = vsyncadd [#allocation3], 4294967040  ;;  %v25_v0 = vld [vmem:[#allocation2] sm:$0xff]  ;;  %v26_v1 = vld [vmem:[#allocation2 + $0x8] sm:$0x1]  ;;  %vm63_vm0 = vcmask 1040384  }
   0x7   :  { %v27_v2 = vmul.f32 0.429043, %v26_v1  ;;  %v28_v3 = vmul.f32 0.429043, %v25_v0  ;;  %v29_v4 = vmul.f32 0.511664, %v25_v0 }
   0x8   :  { %v30_v5 = vmul.f32 -0.429043, %v26_v1  ;;  %vm65_vm1 = vcmask 1041408   ;;  %vm67_vm2 = vcmask 1042432   ;;  %v31_v6 = vmul.f32 0.743152, %v25_v0 }
   0x9   :  { %v39_v7 = vrot.slane %v28_v3, 3  ;;  %v41_v8 = vrot.slane %v28_v3, 5  ;;  %v46_v9 = vrot.slane %v28_v3, 7  ;;  %vm69_vm3 = vcmask 1043456   ;;  %s164_s0 = smov [#allocation5]   ;;  %s92_s16 = sshll.u32 %s200_s1, 4  ;;  %s93_s16 = int_to_ptr.hbm [resolvable:$true] %s92_s16 }
   0xa   :  { %v51_v10 = vrot.slane %v28_v3, 4  ;;  %v32_v11 = vmul.f32 0.886227, %v25_v0  ;;  %v33_v12 = vmul.f32 0.247708, %v25_v0  ;;  %v54_v13 = vrot.slane %v31_v6, 4 }
   0xb   :  { %v44_v14 = vrot.slane %v30_v5, 3  ;;  %v64_v15 = vsel %vm63_vm0, %v27_v2, %v39_v7  ;;  %vm71_vm4 = vcmask 1044480   ;;  %v56_v16 = vrot.slane %v29_v4, 7  ;;  %s90_s13 = sshll.u32 %s164_s0, 4  ;;  %s91_s13 = int_to_ptr.vmem [resolvable:$true] %s90_s13 }
   0xc   :  { %v66_v17 = vsel %vm65_vm1, %v64_v15, %v41_v8  ;;  %v77_v18 = vsel %vm63_vm0, %v46_v9, %v51_v10  ;;  %v35_v19 = vrot.slane %v33_v12, 6  ;;  %v58_v20 = vrot.slane %v29_v4, 4 }
   0xd   :  { %v49_v21 = vrot.slane %v29_v4, 2  ;;  %v68_v22 = vsel %vm67_vm2, %v66_v17, %v29_v4  ;;  %vm73_vm5 = vcmask 1045504   ;;  %v78_v23 = vsel %vm65_vm1, %v77_v18, %v54_v13 }
   0xe   :  { %v70_v24 = vsel %vm69_vm3, %v68_v22, %v28_v3  ;;  %vm75_vm6 = vcmask 1046528   ;;  %v37_v25 = vsub.f32 %v32_v11, %v35_v19  ;;  %v79_v26 = vsel %vm67_vm2, %v78_v23, %v56_v16 }
   0xf   :  { %v72_v27 = vsel %vm71_vm4, %v70_v24, %v44_v14  ;;  %v80_v28 = vsel %vm69_vm3, %v79_v26, %v56_v16 }
  0x10   :  { %v74_v29 = vsel %vm73_vm5, %v72_v27, %v46_v9  ;;  %v61_v30 = vrot.slane %v37_v25, 1  ;;  %v81_v31 = vsel %vm71_vm4, %v80_v28, %v58_v20 }
  0x11   :  { %v76_v32 = vsel %vm75_vm6, %v74_v29, %v49_v21  ;;  %v82_v33 = vsel %vm73_vm5, %v81_v31, %v58_v20 }
  0x12   :  { %84 = vst [vmem:[#allocation5] sm:$0xff] %v76_v32  ;;  %v83_v34 = vsel %vm75_vm6, %v82_v33, %v61_v30 }
  0x13   :  { %85 = vst [vmem:[#allocation5 + $0x8] sm:$0xff] %v83_v34 }
  0x14   :  { %98 = dma.vmem_to_hbm [thread:$0]  %s91_s13, 256, %s93_s16, [#allocation4], %s162_s11, %s162_s11, %s163_s12  }
  0x15   :  { %159 = dma.done.wait [#allocation4], 256  }
  0x16   :  { %160 = vsyncadd [#allocation4], 4294967040 }
  0x17   :  { %103 = vsyncpa [#allocation3], 1 }
  0x18   :  { %104 = vsyncpa [#allocation4], 1 }

</bundles_post_ra>
